<compile_context>
chip_gen: v7x
topology: tpu7x:2x2x1
jax: 0.10.0
libtpu: 0.0.40
codegen_flags: <defaults>
</compile_context>

<pallas_src>
import functools

import jax
import jax.numpy as jnp
from jax import lax
from jax.experimental import pallas as pl
from jax.experimental.pallas import tpu as pltpu

LAMBDA_PARAM = 1.0
COSINE_EPS = 1e-8          # torch.nn.functional.cosine_similarity default eps
_DEFAULT_TILE_ROWS = 2048  # 3 x 2 bufs x 2048 x 384 x 4B ~= 18.9 MiB VMEM


def _round_up(x, m):
    return ((x + m - 1) // m) * m


def _row_dot(a, b):
    """Row-wise dot along the last dim.

    When D is a multiple of 128, pre-reduce the 128-lane chunks with cheap
    VPU adds and finish with a single 128-lane XLU reduce per row.
    """
    d = a.shape[-1]
    prod = a * b
    if d > 128 and d % 128 == 0:
        partial = prod[:, 0:128]
        for c in range(1, d // 128):
            partial = partial + prod[:, c * 128:(c + 1) * 128]
        return jnp.sum(partial, axis=-1, keepdims=True)        # (TB, 1)
    return jnp.sum(prod, axis=-1, keepdims=True)                # (TB, 1)


def _similarity_loss_kernel(q_ref, o_ref, g_ref, loss_ref,
                            acc_qg_ref, acc_og_ref, *, true_batch):
    """One batch tile of: -mean(cos(q,g)) + lambda*(1 - mean(cos(o,g)))."""
    i = pl.program_id(0)

    @pl.when(i == 0)
    def _init():
        acc_qg_ref[...] = jnp.zeros_like(acc_qg_ref)
        acc_og_ref[...] = jnp.zeros_like(acc_og_ref)

    # Per-tile upcast keeps HBM traffic at the (possibly bf16) input dtype.
    q = q_ref[...].astype(jnp.float32)          # (TB, D)
    o = o_ref[...].astype(jnp.float32)
    g = g_ref[...].astype(jnp.float32)
    tb = q.shape[0]

    # Row-wise dots / sums-of-squares; gen norm computed once and reused.
    gg = _row_dot(g, g)                         # (TB, 1)
    qq = _row_dot(q, q)
    oo = _row_dot(o, o)
    qg = _row_dot(q, g)
    og = _row_dot(o, g)

    # PyTorch semantics: dot / sqrt(max(|a|^2 * |b|^2, eps^2)) as one EUP
    # rsqrt plus VPU multiplies.
    eps2 = jnp.float32(COSINE_EPS * COSINE_EPS)
    cos_qg = qg * lax.rsqrt(jnp.maximum(qq * gg, eps2))         # (TB, 1)
    cos_og = og * lax.rsqrt(jnp.maximum(oo * gg, eps2))

    # Mask rows past the true batch (the ragged last tile reads undefined
    # out-of-bounds data), then accumulate with one VPU add per cosine.
    rows_left = jnp.int32(true_batch) - i * tb
    row_ids = lax.broadcasted_iota(jnp.int32, (tb, 1), 0)
    valid = row_ids < rows_left
    acc_qg_ref[...] += jnp.where(valid, cos_qg, 0.0)
    acc_og_ref[...] += jnp.where(valid, cos_og, 0.0)

    @pl.when(i == pl.num_programs(0) - 1)
    def _finalize():
        inv_b = jnp.float32(1.0 / true_batch)
        mean_qg = jnp.sum(acc_qg_ref[...]) * inv_b
        mean_og = jnp.sum(acc_og_ref[...]) * inv_b
        loss_ref[0, 0] = -mean_qg + LAMBDA_PARAM * (1.0 - mean_og)


def similarity_loss(query_embs, orig_embs, gen_embs, *,
                    tile_rows=_DEFAULT_TILE_ROWS):
    """[B, D] embeddings (any float dtype) -> scalar f32 loss."""
    assert query_embs.shape == orig_embs.shape == gen_embs.shape
    assert query_embs.ndim == 2
    B, D = query_embs.shape

    # Row tile: multiple of 8 sublanes, capped by tile_rows and by B itself.
    tb = min(_round_up(B, 8), _round_up(tile_rows, 8))
    grid = (pl.cdiv(B, tb),)

    block = pl.BlockSpec((tb, D), lambda i: (i, 0))

    # Explicit scoped-VMEM budget: 3 inputs x 2 pipeline buffers + the two
    # (tb, 1) accumulators (lane-padded to 128) + margin.  Floored at 16 MiB,
    # capped safely below v7x's 64 MiB physical VMEM.
    itemsize = jnp.dtype(query_embs.dtype).itemsize
    vmem_bytes = 3 * 2 * tb * D * itemsize + 2 * tb * 128 * 4 + (4 << 20)
    vmem_bytes = int(min(max(vmem_bytes, 16 << 20), 48 << 20))

    kernel = functools.partial(_similarity_loss_kernel, true_batch=B)
    out = pl.pallas_call(
        kernel,
        out_shape=jax.ShapeDtypeStruct((1, 1), jnp.float32),
        grid_spec=pltpu.PrefetchScalarGridSpec(
            num_scalar_prefetch=0,
            grid=grid,
            in_specs=[block, block, block],
            out_specs=pl.BlockSpec(memory_space=pltpu.MemorySpace.SMEM),
            scratch_shapes=[pltpu.VMEM((tb, 1), jnp.float32),
                            pltpu.VMEM((tb, 1), jnp.float32)],
        ),
        compiler_params=pltpu.CompilerParams(
            dimension_semantics=("arbitrary",),   # batch axis is a reduction
            vmem_limit_bytes=vmem_bytes),
    )(query_embs, orig_embs, gen_embs)
    return out[0, 0]


def _reference_loss(q, o, g):
    """Pure-JAX reference with PyTorch cosine_similarity eps semantics."""
    def cos(a, b):
        dot = jnp.sum(a * b, axis=-1)
        denom = jnp.sqrt(jnp.maximum(
            jnp.sum(a * a, axis=-1) * jnp.sum(b * b, axis=-1),
            COSINE_EPS * COSINE_EPS))
        return dot / denom
    return -jnp.mean(cos(q, g)) + LAMBDA_PARAM * (1.0 - jnp.mean(cos(o, g)))


if __name__ == "__main__":
    # The module used 2 sentences per list; MiniLM-L6-v2 emits 384-dim vectors.
    B, D = 2, 384
    kq, ko, kg = jax.random.split(jax.random.PRNGKey(0), 3)
    query_embs = jax.random.normal(kq, (B, D), dtype=jnp.float32)
    orig_embs = jax.random.normal(ko, (B, D), dtype=jnp.float32)
    gen_embs = jax.random.normal(kg, (B, D), dtype=jnp.float32)

    loss = similarity_loss(query_embs, orig_embs, gen_embs)
    jax.block_until_ready(loss)
    ref = _reference_loss(query_embs, orig_embs, gen_embs)
    assert jnp.allclose(loss, ref, atol=1e-5, rtol=1e-5), (loss, ref)

    # Multi-tile path with a ragged last tile (40 rows, 16-row tiles -> grid
    # of 3, last tile only half valid) exercises the in-kernel row mask.
    B2 = 40
    kq2, ko2, kg2 = jax.random.split(jax.random.PRNGKey(1), 3)
    q2 = jax.random.normal(kq2, (B2, D), dtype=jnp.float32)
    o2 = jax.random.normal(ko2, (B2, D), dtype=jnp.float32)
    g2 = jax.random.normal(kg2, (B2, D), dtype=jnp.float32)
    loss2 = similarity_loss(q2, o2, g2, tile_rows=16)
    jax.block_until_ready(loss2)
    ref2 = _reference_loss(q2, o2, g2)
    assert jnp.allclose(loss2, ref2, atol=1e-5, rtol=1e-5), (loss2, ref2)

    # bf16 inputs (half the HBM traffic); kernel upcasts per tile, so the
    # result matches the f32 reference on the same bf16 values.
    qb, ob, gb = (x.astype(jnp.bfloat16) for x in (q2, o2, g2))
    loss3 = similarity_loss(qb, ob, gb, tile_rows=16)
    jax.block_until_ready(loss3)
    ref3 = _reference_loss(qb.astype(jnp.float32), ob.astype(jnp.float32),
                           gb.astype(jnp.float32))
    assert jnp.allclose(loss3, ref3, atol=1e-5, rtol=1e-5), (loss3, ref3)

    print("KERNEL_OK")
</pallas_src>

<mosaic_0001>
module attributes {stable_mosaic.version = 11 : i64} {
  func.func @_similarity_loss_kernel(%arg0: i32, %arg1: memref<8x384xf32, #tpu.memory_space<vmem>>, %arg2: memref<8x384xf32, #tpu.memory_space<vmem>>, %arg3: memref<8x384xf32, #tpu.memory_space<vmem>>, %arg4: memref<1x1xf32, #tpu.memory_space<smem>>, %arg5: memref<8x1xf32, #tpu.memory_space<vmem>>, %arg6: memref<8x1xf32, #tpu.memory_space<vmem>>) attributes {dimension_semantics = [#tpu.dimension_semantics<arbitrary>], iteration_bounds = array<i64: 1>, scalar_prefetch = 0 : i64, scratch_operands = 2 : i64, tpu.core_type = #tpu.core_type<tc>, window_params = [{transform_indices = @transform_0, window_bounds = array<i64: 8, 384>}, {transform_indices = @transform_1, window_bounds = array<i64: 8, 384>}, {transform_indices = @transform_2, window_bounds = array<i64: 8, 384>}, {transform_indices = @transform_3, window_bounds = array<i64: 1, 1>}]} {
    %c0_i32 = arith.constant 0 : i32
    %0 = arith.cmpi eq, %arg0, %c0_i32 : i32
    %1 = arith.extui %0 : i1 to i32
    %c0_i32_0 = arith.constant 0 : i32
    %2 = arith.cmpi ne, %1, %c0_i32_0 : i32
    scf.if %2 {
      %cst_24 = arith.constant 0.000000e+00 : f32
      %74 = vector.broadcast %cst_24 : f32 to vector<8x1xf32>
      %c0_25 = arith.constant 0 : index
      %c0_26 = arith.constant 0 : index
      %75 = vector.load %arg5[%c0_25, %c0_26] : memref<8x1xf32, #tpu.memory_space<vmem>>, vector<8x1xf32>
      tpu.vector_store %arg5[%c0_25, %c0_26], %74 {strides = array<i32>} : memref<8x1xf32, #tpu.memory_space<vmem>>, vector<8x1xf32>,
      %cst_27 = arith.constant 0.000000e+00 : f32
      %76 = vector.broadcast %cst_27 : f32 to vector<8x1xf32>
      %c0_28 = arith.constant 0 : index
      %c0_29 = arith.constant 0 : index
      %77 = vector.load %arg6[%c0_28, %c0_29] : memref<8x1xf32, #tpu.memory_space<vmem>>, vector<8x1xf32>
      tpu.vector_store %arg6[%c0_28, %c0_29], %76 {strides = array<i32>} : memref<8x1xf32, #tpu.memory_space<vmem>>, vector<8x1xf32>,
    } else {
    }
    %c0 = arith.constant 0 : index
    %c0_1 = arith.constant 0 : index
    %3 = vector.load %arg1[%c0, %c0_1] : memref<8x384xf32, #tpu.memory_space<vmem>>, vector<8x384xf32>
    %c0_2 = arith.constant 0 : index
    %c0_3 = arith.constant 0 : index
    %4 = vector.load %arg2[%c0_2, %c0_3] : memref<8x384xf32, #tpu.memory_space<vmem>>, vector<8x384xf32>
    %c0_4 = arith.constant 0 : index
    %c0_5 = arith.constant 0 : index
    %5 = vector.load %arg3[%c0_4, %c0_5] : memref<8x384xf32, #tpu.memory_space<vmem>>, vector<8x384xf32>
    %6 = arith.mulf %5, %5 : vector<8x384xf32>
    %7 = vector.extract_strided_slice %6 {offsets = [0, 0], sizes = [8, 128], strides = [1, 1]} : vector<8x384xf32> to vector<8x128xf32>
    %8 = vector.extract_strided_slice %6 {offsets = [0, 128], sizes = [8, 128], strides = [1, 1]} : vector<8x384xf32> to vector<8x128xf32>
    %9 = arith.addf %7, %8 : vector<8x128xf32>
    %10 = vector.extract_strided_slice %6 {offsets = [0, 256], sizes = [8, 128], strides = [1, 1]} : vector<8x384xf32> to vector<8x128xf32>
    %11 = arith.addf %9, %10 : vector<8x128xf32>
    %cst = arith.constant dense<0.000000e+00> : vector<8xf32>
    %12 = vector.multi_reduction <add>, %11, %cst [1] : vector<8x128xf32> to vector<8xf32>
    %13 = vector.shape_cast %12 : vector<8xf32> to vector<8x1xf32>
    %14 = arith.mulf %3, %3 : vector<8x384xf32>
    %15 = vector.extract_strided_slice %14 {offsets = [0, 0], sizes = [8, 128], strides = [1, 1]} : vector<8x384xf32> to vector<8x128xf32>
    %16 = vector.extract_strided_slice %14 {offsets = [0, 128], sizes = [8, 128], strides = [1, 1]} : vector<8x384xf32> to vector<8x128xf32>
    %17 = arith.addf %15, %16 : vector<8x128xf32>
    %18 = vector.extract_strided_slice %14 {offsets = [0, 256], sizes = [8, 128], strides = [1, 1]} : vector<8x384xf32> to vector<8x128xf32>
    %19 = arith.addf %17, %18 : vector<8x128xf32>
    %cst_6 = arith.constant dense<0.000000e+00> : vector<8xf32>
    %20 = vector.multi_reduction <add>, %19, %cst_6 [1] : vector<8x128xf32> to vector<8xf32>
    %21 = vector.shape_cast %20 : vector<8xf32> to vector<8x1xf32>
    %22 = arith.mulf %4, %4 : vector<8x384xf32>
    %23 = vector.extract_strided_slice %22 {offsets = [0, 0], sizes = [8, 128], strides = [1, 1]} : vector<8x384xf32> to vector<8x128xf32>
    %24 = vector.extract_strided_slice %22 {offsets = [0, 128], sizes = [8, 128], strides = [1, 1]} : vector<8x384xf32> to vector<8x128xf32>
    %25 = arith.addf %23, %24 : vector<8x128xf32>
    %26 = vector.extract_strided_slice %22 {offsets = [0, 256], sizes = [8, 128], strides = [1, 1]} : vector<8x384xf32> to vector<8x128xf32>
    %27 = arith.addf %25, %26 : vector<8x128xf32>
    %cst_7 = arith.constant dense<0.000000e+00> : vector<8xf32>
    %28 = vector.multi_reduction <add>, %27, %cst_7 [1] : vector<8x128xf32> to vector<8xf32>
    %29 = vector.shape_cast %28 : vector<8xf32> to vector<8x1xf32>
    %30 = arith.mulf %3, %5 : vector<8x384xf32>
    %31 = vector.extract_strided_slice %30 {offsets = [0, 0], sizes = [8, 128], strides = [1, 1]} : vector<8x384xf32> to vector<8x128xf32>
    %32 = vector.extract_strided_slice %30 {offsets = [0, 128], sizes = [8, 128], strides = [1, 1]} : vector<8x384xf32> to vector<8x128xf32>
    %33 = arith.addf %31, %32 : vector<8x128xf32>
    %34 = vector.extract_strided_slice %30 {offsets = [0, 256], sizes = [8, 128], strides = [1, 1]} : vector<8x384xf32> to vector<8x128xf32>
    %35 = arith.addf %33, %34 : vector<8x128xf32>
    %cst_8 = arith.constant dense<0.000000e+00> : vector<8xf32>
    %36 = vector.multi_reduction <add>, %35, %cst_8 [1] : vector<8x128xf32> to vector<8xf32>
    %37 = vector.shape_cast %36 : vector<8xf32> to vector<8x1xf32>
    %38 = arith.mulf %4, %5 : vector<8x384xf32>
    %39 = vector.extract_strided_slice %38 {offsets = [0, 0], sizes = [8, 128], strides = [1, 1]} : vector<8x384xf32> to vector<8x128xf32>
    %40 = vector.extract_strided_slice %38 {offsets = [0, 128], sizes = [8, 128], strides = [1, 1]} : vector<8x384xf32> to vector<8x128xf32>
    %41 = arith.addf %39, %40 : vector<8x128xf32>
    %42 = vector.extract_strided_slice %38 {offsets = [0, 256], sizes = [8, 128], strides = [1, 1]} : vector<8x384xf32> to vector<8x128xf32>
    %43 = arith.addf %41, %42 : vector<8x128xf32>
    %cst_9 = arith.constant dense<0.000000e+00> : vector<8xf32>
    %44 = vector.multi_reduction <add>, %43, %cst_9 [1] : vector<8x128xf32> to vector<8xf32>
    %45 = vector.shape_cast %44 : vector<8xf32> to vector<8x1xf32>
    %46 = arith.mulf %21, %13 : vector<8x1xf32>
    %cst_10 = arith.constant 1.000000e-16 : f32
    %47 = vector.broadcast %cst_10 : f32 to vector<8x1xf32>
    %48 = arith.maximumf %46, %47 : vector<8x1xf32>
    %49 = math.rsqrt %48 : vector<8x1xf32>
    %50 = arith.mulf %37, %49 : vector<8x1xf32>
    %51 = arith.mulf %29, %13 : vector<8x1xf32>
    %cst_11 = arith.constant 1.000000e-16 : f32
    %52 = vector.broadcast %cst_11 : f32 to vector<8x1xf32>
    %53 = arith.maximumf %51, %52 : vector<8x1xf32>
    %54 = math.rsqrt %53 : vector<8x1xf32>
    %55 = arith.mulf %45, %54 : vector<8x1xf32>
    %c8_i32 = arith.constant 8 : i32
    %56 = arith.muli %arg0, %c8_i32 : i32
    %c2_i32 = arith.constant 2 : i32
    %57 = arith.subi %c2_i32, %56 : i32
    %58 = tpu.iota {dimensions = array<i32: 0>} : vector<8x1xi32>
    %59 = vector.broadcast %57 : i32 to vector<8x1xi32>
    %60 = arith.cmpi slt, %58, %59 : vector<8x1xi32>
    %c0_12 = arith.constant 0 : index
    %c0_13 = arith.constant 0 : index
    %61 = vector.load %arg5[%c0_12, %c0_13] : memref<8x1xf32, #tpu.memory_space<vmem>>, vector<8x1xf32>
    %cst_14 = arith.constant 0.000000e+00 : f32
    %62 = vector.broadcast %cst_14 : f32 to vector<8x1xf32>
    %63 = arith.select %60, %50, %62 : vector<8x1xi1>, vector<8x1xf32>
    %64 = arith.addf %61, %63 : vector<8x1xf32>
    %c0_15 = arith.constant 0 : index
    %c0_16 = arith.constant 0 : index
    %65 = vector.load %arg5[%c0_15, %c0_16] : memref<8x1xf32, #tpu.memory_space<vmem>>, vector<8x1xf32>
    tpu.vector_store %arg5[%c0_15, %c0_16], %64 {strides = array<i32>} : memref<8x1xf32, #tpu.memory_space<vmem>>, vector<8x1xf32>,
    %c0_17 = arith.constant 0 : index
    %c0_18 = arith.constant 0 : index
    %66 = vector.load %arg6[%c0_17, %c0_18] : memref<8x1xf32, #tpu.memory_space<vmem>>, vector<8x1xf32>
    %cst_19 = arith.constant 0.000000e+00 : f32
    %67 = vector.broadcast %cst_19 : f32 to vector<8x1xf32>
    %68 = arith.select %60, %55, %67 : vector<8x1xi1>, vector<8x1xf32>
    %69 = arith.addf %66, %68 : vector<8x1xf32>
    %c0_20 = arith.constant 0 : index
    %c0_21 = arith.constant 0 : index
    %70 = vector.load %arg6[%c0_20, %c0_21] : memref<8x1xf32, #tpu.memory_space<vmem>>, vector<8x1xf32>
    tpu.vector_store %arg6[%c0_20, %c0_21], %69 {strides = array<i32>} : memref<8x1xf32, #tpu.memory_space<vmem>>, vector<8x1xf32>,
    %c0_i32_22 = arith.constant 0 : i32
    %71 = arith.cmpi eq, %arg0, %c0_i32_22 : i32
    %72 = arith.extui %71 : i1 to i32
    %c0_i32_23 = arith.constant 0 : i32
    %73 = arith.cmpi ne, %72, %c0_i32_23 : i32
    scf.if %73 {
      %c0_24 = arith.constant 0 : index
      %c0_25 = arith.constant 0 : index
      %74 = vector.load %arg5[%c0_24, %c0_25] : memref<8x1xf32, #tpu.memory_space<vmem>>, vector<8x1xf32>
      %75 = vector.shape_cast %74 : vector<8x1xf32> to vector<1x8x1xf32>
      %cst_26 = arith.constant dense<0.000000e+00> : vector<1xf32>
      %76 = vector.multi_reduction <add>, %75, %cst_26 [1, 2] : vector<1x8x1xf32> to vector<1xf32>
      %77 = vector.shape_cast %76 : vector<1xf32> to vector<1x1x1xf32>
      %78 = vector.extract %77[0, 0, 0] : f32 from vector<1x1x1xf32>
      %cst_27 = arith.constant 5.000000e-01 : f32
      %79 = arith.mulf %78, %cst_27 : f32
      %c0_28 = arith.constant 0 : index
      %c0_29 = arith.constant 0 : index
      %80 = vector.load %arg6[%c0_28, %c0_29] : memref<8x1xf32, #tpu.memory_space<vmem>>, vector<8x1xf32>
      %81 = vector.shape_cast %80 : vector<8x1xf32> to vector<1x8x1xf32>
      %cst_30 = arith.constant dense<0.000000e+00> : vector<1xf32>
      %82 = vector.multi_reduction <add>, %81, %cst_30 [1, 2] : vector<1x8x1xf32> to vector<1xf32>
      %83 = vector.shape_cast %82 : vector<1xf32> to vector<1x1x1xf32>
      %84 = vector.extract %83[0, 0, 0] : f32 from vector<1x1x1xf32>
      %cst_31 = arith.constant 5.000000e-01 : f32
      %85 = arith.mulf %84, %cst_31 : f32
      %cst_32 = arith.constant 0.000000e+00 : f32
      %86 = arith.subf %cst_32, %79 : f32
      %cst_33 = arith.constant 1.000000e+00 : f32
      %87 = arith.subf %cst_33, %85 : f32
      %cst_34 = arith.constant 1.000000e+00 : f32
      %88 = arith.mulf %cst_34, %87 : f32
      %89 = arith.addf %86, %88 : f32
      %c0_35 = arith.constant 0 : index
      %c0_36 = arith.constant 0 : index
      %90 = memref.load %arg4[%c0_35, %c0_36] : memref<1x1xf32, #tpu.memory_space<smem>>
      memref.store %89, %arg4[%c0_35, %c0_36] : memref<1x1xf32, #tpu.memory_space<smem>>
    } else {
    }
    return
  }
  func.func @transform_0(%arg0: i32) -> (i32, i32) {
    %c0_i32 = arith.constant 0 : i32
    %c0_i32_0 = arith.constant 0 : i32
    return %arg0, %c0_i32 : i32, i32
  }
  func.func @transform_1(%arg0: i32) -> (i32, i32) {
    %c0_i32 = arith.constant 0 : i32
    %c0_i32_0 = arith.constant 0 : i32
    return %arg0, %c0_i32 : i32, i32
  }
  func.func @transform_2(%arg0: i32) -> (i32, i32) {
    %c0_i32 = arith.constant 0 : i32
    %c0_i32_0 = arith.constant 0 : i32
    return %arg0, %c0_i32 : i32, i32
  }
  func.func @transform_3(%arg0: i32) -> (i32, i32) {
    %c0_i32 = arith.constant 0 : i32
    %c0_i32_0 = arith.constant 0 : i32
    %c0_i32_1 = arith.constant 0 : i32
    return %c0_i32, %c0_i32_0 : i32, i32
  }
}

</mosaic_0001>

<bundles_post_ra>
// kernel: tpu_custom_call.1
= control target key start
LH: loop header
LB: loop body
LE: loop exit
PB: predicated region body
PF: predicated region fallthrough
CT: control target
= control target key end

     0   :  { %8 = vsyncpa [#allocation5], 0  ;;  %s638_s0 = inlined_call_operand.hbm [shape: f32[2,384], index: 0, kind: input, shape index: {}]   ;;  %s639_s1 = inlined_call_operand.hbm [shape: f32[2,384], index: 1, kind: input, shape index: {}]   ;;  %s640_s2 = inlined_call_operand.vmem [shape: f32[2,384], index: 2, kind: input, shape index: {}]   ;;  %s641_s3 = inlined_call_operand.hbm [shape: f32[1,1], index: 3, kind: output, shape index: {}]  }
   0x1   :  { %9 = vsyncpa [#allocation8], 0 }
   0x2   :  { %10 = vsyncpa [#allocation6], 0 }
   0x3   :  { %15 = vsyncadd [#allocation5], 288  ;;  %s487_s12 = smov [#allocation4]   ;;  %s427_s16 = scalar_lea.hbm %s638_s0, 96 }
   0x4   :  { %s16_s13 = sshll.u32 %s487_s12, 4  ;;  %p428_p0 = scmp.ne.s32.totalorder %s638_s0, %s427_s16  ;;  %s17_s13 = int_to_ptr.vmem [resolvable:$true] %s16_s13 }
   0x5   :  { %p431_p1 = scmp.lt.u32.totalorder %s427_s16, %s638_s0 }
   0x7   :  { %p433_p2 = pnand %p431_p1, %p428_p0 }
   0x9   :  { %436 = shalt.err (!%p433_p2)
}
   0xa   :  { %s437_s21 = scalar_lea.vmem %s17_s13, 96  ;;  %s441_s22 = scalar_lea.vmem %s17_s13, 384 }
   0xb   :  { %p438_p3 = scmp.ne.s32.totalorder %s17_s13, %s437_s21  ;;  %p442_p4 = scmp.lt.s32.totalorder %s17_s13, %s17_s13 }
   0xc   :  { %p443_p5 = scmp.lt.s32.totalorder %s441_s22, %s437_s21 }
   0xe   :  { %p444_p6 = por %p443_p5, %p442_p4 }
  0x10   :  { %p445_p7 = pnand %p444_p6, %p438_p3 }
  0x12   :  { %448 = shalt.err (!%p445_p7)
}
  0x13   :  { %s488_s23 = smov 96   ;;  %s489_s24 = smov 6  }
  0x14   :  { %22 = dma.hbm_to_vmem [thread:$0]  %s638_s0, 96, %s17_s13, [#allocation5], %s488_s23, %s488_s23, %s489_s24  }
  0x15   :  { %27 = vsyncadd [#allocation8], 288  ;;  %s490_s27 = smov [#allocation7]   ;;  %s449_s4 = scalar_lea.hbm %s639_s1, 96 }
  0x16   :  { %s28_s28 = sshll.u32 %s490_s27, 4  ;;  %p450_p8 = scmp.ne.s32.totalorder %s639_s1, %s449_s4  ;;  %s29_s28 = int_to_ptr.vmem [resolvable:$true] %s28_s28 }
  0x17   :  { %p453_p9 = scmp.lt.u32.totalorder %s449_s4, %s639_s1 }
  0x19   :  { %p455_p10 = pnand %p453_p9, %p450_p8 }
  0x1b   :  { %458 = shalt.err (!%p455_p10)
}
  0x1c   :  { %s459_s9 = scalar_lea.vmem %s29_s28, 96  ;;  %s463_s0 = scalar_lea.vmem %s29_s28, 384 }
  0x1d   :  { %p460_p11 = scmp.ne.s32.totalorder %s29_s28, %s459_s9  ;;  %p464_p12 = scmp.lt.s32.totalorder %s29_s28, %s29_s28 }
  0x1e   :  { %p465_p13 = scmp.lt.s32.totalorder %s463_s0, %s459_s9 }
  0x20   :  { %p466_p0 = por %p465_p13, %p464_p12 }
  0x22   :  { %p467_p1 = pnand %p466_p0, %p460_p11 }
  0x24   :  { %470 = shalt.err (!%p467_p1)
}
  0x25   :  { %34 = dma.hbm_to_vmem [thread:$0]  %s639_s1, 96, %s29_s28, [#allocation8], %s488_s23, %s488_s23, %s489_s24  }
  0x26   :  { %481 = dma.done.wait [#allocation5], 384  }
  0x27   :  { %482 = vsyncadd [#allocation5], 4294966912 }
  0x28   :  { %483 = dma.done.wait [#allocation8], 384  }
  0x29   :  { %484 = vsyncadd [#allocation8], 4294966912  ;;  %v103_v0 = vlaneseq  ;;  %v491_v1 = vmov 1983009808   ;;  %v543_v5 = vld [vmem:[%s640_s2] sm:$0x3f] }
  0x2a   :  { %v101_v2 = vunpack.c.l.s4 %v491_v1  ;;  %v548_v6 = vld [vmem:[%s640_s2 + $0x6] sm:$0x3f]  ;;  %v553_v7 = vld [vmem:[%s640_s2 + $0xc] sm:$0x3f]  ;;  %v558_v8 = vld [vmem:[%s640_s2 + $0x12] sm:$0x3f]  ;;  %v62_v9 = vmul.f32 %v543_v5, %v543_v5 }
  0x2b   :  { %v538_v4 = vshrl.u32 %v103_v0, 7  ;;  %v63_v10 = vmul.f32 %v548_v6, %v548_v6  ;;  %v64_v11 = vmul.f32 %v553_v7, %v553_v7  ;;  %v54_v13 = vld [vmem:[#allocation7] sm:$0x3f]  ;;  %v569_v14 = vld [vmem:[#allocation7 + $0x6] sm:$0x3f]  ;;  %v65_v15 = vmul.f32 %v558_v8, %v558_v8  ;;  %s471_s27 = scalar_lea.hbm %s641_s3, 16 }
  0x2c   :  { %v102_v3 = vunpack.c.0.s8 %v101_v2  ;;  %v573_v16 = vld [vmem:[#allocation7 + $0xc] sm:$0x3f]  ;;  %v174_v17 = vmul.f32 %v54_v13, %v54_v13  ;;  %v175_v18 = vmul.f32 %v569_v14, %v569_v14  ;;  %v578_v19 = vmul.f32 %v543_v5, %v54_v13  ;;  %v580_v24 = vld [vmem:[#allocation7 + $0x12] sm:$0x3f]  ;;  %v53_v56 = vld [vmem:[#allocation4 + $0x12] sm:$0x3f]  ;;  %p472_p2 = scmp.ne.s32.totalorder %s641_s3, %s471_s27  ;;  %p475_p3 = scmp.lt.u32.totalorder %s471_s27, %s641_s3 }
  0x2d   :  { %v70_v20 = vrot.slane %v62_v9, 2  ;;  %v71_v21 = vrot.slane %v63_v10, 2  ;;  %v72_v22 = vrot.slane %v64_v11, 2  ;;  %v82_v23 = vrot.slane %v62_v9, 4  ;;  %v586_v45 = vld [vmem:[#allocation4] sm:$0x3f] }
  0x2e   :  { %v567_v12 = vsub.s32 %v102_v3, %v538_v4  ;;  %v73_v25 = vrot.slane %v65_v15, 2  ;;  %v83_v26 = vrot.slane %v63_v10, 4  ;;  %v84_v27 = vrot.slane %v64_v11, 4  ;;  %v588_v50 = vld [vmem:[#allocation4 + $0x6] sm:$0x3f]  ;;  %p477_p4 = pnand %p475_p3, %p472_p2 }
  0x2f   :  { %v85_v28 = vrot.slane %v65_v15, 4  ;;  %v78_v29 = vadd.f32 %v70_v20, %v62_v9  ;;  %v79_v30 = vadd.f32 %v71_v21, %v63_v10  ;;  %v80_v31 = vadd.f32 %v72_v22, %v64_v11  ;;  %v52_v55 = vld [vmem:[#allocation4 + $0xc] sm:$0x3f] }
  0x30   :  { %v176_v32 = vmul.f32 %v573_v16, %v573_v16  ;;  %v81_v33 = vadd.f32 %v73_v25, %v65_v15  ;;  %v177_v34 = vmul.f32 %v580_v24, %v580_v24  ;;  %v182_v35 = vrot.slane %v174_v17, 2 }
  0x31   :  { %v183_v36 = vrot.slane %v175_v18, 2  ;;  %v90_v37 = vadd.f32 %v82_v23, %v78_v29  ;;  %v91_v38 = vadd.f32 %v83_v26, %v79_v30  ;;  %v92_v39 = vadd.f32 %v84_v27, %v80_v31 }
  0x32   :  { %v184_v40 = vrot.slane %v176_v32, 2  ;;  %v93_v41 = vadd.f32 %v85_v28, %v81_v33  ;;  %v185_v42 = vrot.slane %v177_v34, 2  ;;  %v190_v43 = vadd.f32 %v182_v35, %v174_v17 }
  0x33   :  { %v191_v44 = vadd.f32 %v183_v36, %v175_v18  ;;  %v98_v46 = vcombine.low %v90_v37, %v91_v38  ;;  %v194_v48 = vrot.slane %v174_v17, 4  ;;  %v195_v49 = vrot.slane %v175_v18, 4 }
  0x34   :  { %v192_v47 = vadd.f32 %v184_v40, %v176_v32  ;;  %v99_v51 = vcombine.low %v92_v39, %v93_v41  ;;  %v193_v52 = vadd.f32 %v185_v42, %v177_v34  ;;  %v196_v53 = vrot.slane %v176_v32, 4 }
  0x35   :  { %v197_v54 = vrot.slane %v177_v34, 4  ;;  %v106_v57 = vrot.slane %v98_v46, %v567_v12  ;;  %v202_v58 = vadd.f32 %v194_v48, %v190_v43  ;;  %v203_v59 = vadd.f32 %v195_v49, %v191_v44 }
  0x36   :  { %v118_v60 = vmul.f32 %v586_v45, %v586_v45  ;;  %v113_v61 = vrot.slane %v99_v51, %v567_v12  ;;  %v204_v62 = vadd.f32 %v196_v53, %v192_v47  ;;  %v119_v0 = vmul.f32 %v588_v50, %v588_v50 }
  0x37   :  { %v205_v63 = vadd.f32 %v197_v54, %v193_v52  ;;  %v210_v1 = vcombine.low %v202_v58, %v203_v59  ;;  %v120_v2 = vmul.f32 %v52_v55, %v52_v55  ;;  %v121_v3 = vmul.f32 %v53_v56, %v53_v56 }
  0x38   :  { %v126_v9 = vrot.slane %v118_v60, 2  ;;  %v114_v10 = vcombine.low %v106_v57, %v113_v61  ;;  %v127_v13 = vrot.slane %v119_v0, 2  ;;  %v138_v15 = vrot.slane %v118_v60, 4 }
  0x39   :  { %v211_v11 = vcombine.low %v204_v62, %v205_v63  ;;  %v218_v17 = vrot.slane %v210_v1, %v567_v12  ;;  %v128_v18 = vrot.slane %v120_v2, 2  ;;  %v129_v20 = vrot.slane %v121_v3, 2 }
  0x3a   :  { %v134_v21 = vadd.f32 %v126_v9, %v118_v60  ;;  %116 = vadd.xlane.f32.xlu0 %v114_v10  ;;  %v135_v23 = vadd.f32 %v127_v13, %v119_v0  ;;  %v139_v25 = vrot.slane %v119_v0, 4  ;;  %v140_v26 = vrot.slane %v120_v2, 4 }
  0x3b   :  { %v225_v22 = vrot.slane %v211_v11, %v567_v12  ;;  %v136_v27 = vadd.f32 %v128_v18, %v120_v2  ;;  %v137_v28 = vadd.f32 %v129_v20, %v121_v3  ;;  %v141_v29 = vrot.slane %v121_v3, 4 }
  0x3c   :  { %v146_v30 = vadd.f32 %v138_v15, %v134_v21  ;;  %v147_v32 = vadd.f32 %v139_v25, %v135_v23  ;;  %v287_v33 = vmul.f32 %v548_v6, %v569_v14  ;;  %v288_v34 = vmul.f32 %v553_v7, %v573_v16 }
  0x3d   :  { %v226_v31 = vcombine.low %v218_v17, %v225_v22  ;;  %v148_v35 = vadd.f32 %v140_v26, %v136_v27  ;;  %v149_v36 = vadd.f32 %v141_v29, %v137_v28  ;;  %v289_v37 = vmul.f32 %v558_v8, %v580_v24 }
  0x3e   :  { %v294_v38 = vrot.slane %v578_v19, 2  ;;  %v154_v39 = vcombine.low %v146_v30, %v147_v32  ;;  %v295_v40 = vrot.slane %v287_v33, 2  ;;  %v296_v41 = vrot.slane %v288_v34, 2 }
  0x3f   :  { %228 = vadd.xlane.f32.xlu1 %v226_v31  ;;  %v306_v42 = vrot.slane %v578_v19, 4  ;;  %v155_v43 = vcombine.low %v148_v35, %v149_v36  ;;  %v297_v44 = vrot.slane %v289_v37, 2  ;;  %v307_v46 = vrot.slane %v287_v33, 4 }
  0x40   :  { %v302_v14 = vadd.f32 %v294_v38, %v578_v19  ;;  %v162_v16 = vrot.slane %v154_v39, %v567_v12  ;;  %v303_v47 = vadd.f32 %v295_v40, %v287_v33  ;;  %v304_v48 = vadd.f32 %v296_v41, %v288_v34 }
  0x41   :  { %v308_v49 = vrot.slane %v288_v34, 4  ;;  %v169_v24 = vrot.slane %v155_v43, %v567_v12  ;;  %v305_v51 = vadd.f32 %v297_v44, %v289_v37  ;;  %v309_v52 = vrot.slane %v289_v37, 4 }
  0x42   :  { %v314_v53 = vadd.f32 %v306_v42, %v302_v14  ;;  %v315_v54 = vadd.f32 %v307_v46, %v303_v47  ;;  %v230_v58 = vmul.f32 %v543_v5, %v586_v45  ;;  %v231_v59 = vmul.f32 %v548_v6, %v588_v50 }
  0x43   :  { %v316_v57 = vadd.f32 %v308_v49, %v304_v48  ;;  %v170_v19 = vcombine.low %v162_v16, %v169_v24  ;;  %v317_v60 = vadd.f32 %v309_v52, %v305_v51  ;;  %v232_v61 = vmul.f32 %v553_v7, %v52_v55 }
  0x44   :  { %v233_v62 = vmul.f32 %v558_v8, %v53_v56  ;;  %v322_v63 = vcombine.low %v314_v53, %v315_v54  ;;  %v238_v0 = vrot.slane %v230_v58, 2  ;;  %v239_v1 = vrot.slane %v231_v59, 2 }
  0x45   :  { %v250_v2 = vrot.slane %v230_v58, 4  ;;  %172 = vadd.xlane.f32.xlu0 %v170_v19  ;;  %v323_v3 = vcombine.low %v316_v57, %v317_v60  ;;  %v240_v9 = vrot.slane %v232_v61, 2  ;;  %v251_v11 = vrot.slane %v231_v59, 4 }
  0x46   :  { %v241_v10 = vrot.slane %v233_v62, 2  ;;  %v330_v5 = vrot.slane %v322_v63, %v567_v12  ;;  %v246_v45 = vadd.f32 %v238_v0, %v230_v58  ;;  %v247_v13 = vadd.f32 %v239_v1, %v231_v59 }
  0x47   :  { %v252_v6 = vrot.slane %v232_v61, 4  ;;  %v337_v50 = vrot.slane %v323_v3, %v567_v12  ;;  %v248_v15 = vadd.f32 %v240_v9, %v232_v61  ;;  %v253_v55 = vrot.slane %v233_v62, 4 }
  0x48   :  { %v249_v7 = vadd.f32 %v241_v10, %v233_v62  ;;  %v258_v8 = vadd.f32 %v250_v2, %v246_v45  ;;  %v259_v56 = vadd.f32 %v251_v11, %v247_v13  ;;  %vm47_vm0 = vcmask 7168  }
  0x49   :  { %v338_v17 = vcombine.low %v330_v5, %v337_v50  ;;  %v260_v18 = vadd.f32 %v252_v6, %v248_v15  ;;  %v492_v27 = vmov 0.0   ;;  %vm355_vm1 = vcmp.lt.s32.totalorder %v538_v4, 2 }
  0x4a   :  { %v261_v20 = vadd.f32 %v253_v55, %v249_v7  ;;  %v266_v21 = vcombine.low %v258_v8, %v259_v56  ;;  %49 = vst.msk [vmem:[#allocation3] sm:$0xff] %vm47_vm0, %v492_v27  ;;  %48 = vst.msk [vmem:[#allocation2] sm:$0xff] %vm47_vm0, %v492_v27 }
  0x4b   :  { %340 = vadd.xlane.f32.xlu0 %v338_v17 }
  0x4c   :  { %v267_v22 = vcombine.low %v260_v18, %v261_v20  ;;  %v274_v23 = vrot.slane %v266_v21, %v567_v12 }
  0x4e   :  { %v281_v25 = vrot.slane %v267_v22, %v567_v12 }
  0x50   :  { %v282_v26 = vcombine.low %v274_v23, %v281_v25 }
  0x51   :  { %v361_v37 = vld [vmem:[#allocation3] sm:$0xff]  ;;  %v356_v43 = vld [vmem:[#allocation2] sm:$0xff] }
  0x52   :  { %284 = vadd.xlane.f32.xlu1 %v282_v26 }
  0xc7   :  { %v117_v28 = vpop.xlane.xlu0 %116 }
  0xcc   :  { %v229_v29 = vpop.xlane.xlu1 %228 }
  0xcd   :  { %v346_v30 = vmul.f32 %v229_v29, %v117_v28 }
  0xcf   :  { %v347_v31 = vmax.f32 %v346_v30, 1e-16 }
  0xd1   :  { %423 = vrsqrt.f32 %v347_v31 }
  0xd2   :  { %v173_v32 = vpop.xlane.xlu0 %172 }
  0xd3   :  { %v342_v33 = vmul.f32 %v173_v32, %v117_v28 }
  0xd5   :  { %v343_v34 = vmax.f32 %v342_v33, 1e-16 }
  0xd7   :  { %425 = vrsqrt.f32 %v343_v34 }
  0xd8   :  { %v341_v35 = vpop.xlane.xlu0 %340 }
  0xdb   :  { %v424_v36 = vpop.eup %423 }
  0xdc   :  { %v349_v12 = vmul.f32 %v424_v36, %v341_v35 }
  0xde   :  { %v362_v38 = vsel %vm355_vm1, %v349_v12, 0.0 }
  0xdf   :  { %v363_v39 = vadd.f32 %v362_v38, %v361_v37  ;;  %v285_v40 = vpop.xlane.xlu1 %284 }
  0xe1   :  { %364 = vst.msk [vmem:[#allocation3] sm:$0xff] %vm47_vm0, %v363_v39  ;;  %v426_v41 = vpop.eup %425 }
  0xe2   :  { %v345_v42 = vmul.f32 %v426_v41, %v285_v40 }
  0xe4   :  { %v357_v44 = vsel %vm355_vm1, %v345_v42, 0.0 }
  0xe5   :  { %v358_v14 = vadd.f32 %v357_v44, %v356_v43 }
  0xe7   :  { %360 = vst.msk [vmem:[#allocation2] sm:$0xff] %vm47_vm0, %v358_v14 }
  0xe8   :  { %v380_v46 = vld [vmem:[#allocation3] sm:$0xff] }
  0xe9   :  { %v381_v16 = vsel %vm47_vm0, %v380_v46, 0.0 }
  0xea   :  { %382 = vadd.xlane.f32.xlu0 %v381_v16 }
  0xee   :  { %v368_v47 = vld [vmem:[#allocation2] sm:$0xff] }
  0xef   :  { %v369_v4 = vsel %vm47_vm0, %v368_v47, 0.0 }
  0xf0   :  { %370 = vadd.xlane.f32.xlu1 %v369_v4 }
 0x177   :  { %v383_v48 = vpop.xlane.xlu0 %382 }
 0x178   :  { %v384_v49 = vrot.slane %v383_v48, 4 }
 0x17a   :  { %v385_v24 = vadd.f32 %v384_v49, %v383_v48 }
 0x17c   :  { %v386_v51 = vrot.slane %v385_v24, 2 }
 0x17d   :  { %v371_v52 = vpop.xlane.xlu1 %370 }
 0x17e   :  { %v372_v53 = vrot.slane %v371_v52, 4  ;;  %v387_v57 = vadd.f32 %v386_v51, %v385_v24 }
 0x180   :  { %v373_v54 = vadd.f32 %v372_v53, %v371_v52  ;;  %v388_v19 = vrot.slane %v387_v57, 1 }
 0x182   :  { %v374_v58 = vrot.slane %v373_v54, 2  ;;  %v389_v62 = vadd.f32 %v388_v19, %v387_v57 }
 0x184   :  { %v375_v59 = vadd.f32 %v374_v58, %v373_v54 }
 0x186   :  { %v376_v60 = vrot.slane %v375_v59, 1 }
 0x188   :  { %v377_v61 = vadd.f32 %v376_v60, %v375_v59 }
 0x18a   :  { %412 = vpush %v377_v61 }
 0x18b   :  { %414 = vpush %v389_v62 }
 0x1bb   :  { %s413_s2 = spop %412 }
 0x1bc   :  { %s379_s19 = smul.f32 0.5, %s413_s2  ;;  %s415_s20 = spop %414 }
 0x1bd   :  { %s391_s21 = smul.f32 0.5, %s415_s20 }
 0x1be   :  { %s392_s22 = ssub.f32 0.0, %s379_s19 }
 0x1bf   :  { %s393_s23 = ssub.f32 1.0, %s391_s21 }
 0x1c1   :  { %s394_s24 = sadd.f32 %s393_s23, %s392_s22 }
 0x1c3   :  { %396 = sst [smem:[#allocation9]] %s394_s24 }
 0x1c4   :  { %480 = shalt.err (!%p477_p4)
}
 0x1c5   :  { %s493_s5 = smov [#allocation9]  }
 0x1c6   :  { %404 = dma.smem_to_hbm %s493_s5, 16, %s641_s3, [#allocation6]  }
 0x1c7   :  { %485 = dma.done.wait [#allocation6], 16  }
 0x1c8   :  { %486 = vsyncadd [#allocation6], 4294967280 }
 0x1c9   :  { %408 = sfence }
 0x1ca   :  { %409 = vsyncpa [#allocation5], 1 }
 0x1cb   :  { %410 = vsyncpa [#allocation8], 1 }
 0x1cc   :  { %411 = vsyncpa [#allocation6], 1 }

</bundles_post_ra>
